<compile_context>
chip_gen: v6e
topology: v6e:2x2x1
jax: 0.10.0
libtpu: 0.0.40
codegen_flags: <defaults>
</compile_context>

<pallas_src>
import functools

import jax
import jax.numpy as jnp
from jax import lax
from jax.experimental import pallas as pl
from jax.experimental.pallas import tpu as pltpu


def _round_up(x, m):
    return ((x + m - 1) // m) * m


def _default_vmem_limit_bytes():
    # ~3/4 of physical VMEM, capped: ~96 MiB on v5e/v6e (128 MiB), ~48 MiB on v7x (64 MiB).
    try:
        cap = int(pltpu.get_tpu_info().vmem_capacity_bytes)
    except Exception:
        cap = 64 * 1024 * 1024
    return min(cap * 3 // 4, 100 * 1024 * 1024)


def _pick_chunk(c, s):
    # Lane-chunk for the fused kernel: keep a (C, chunk) f32 temporary ~512 KiB.
    target = (512 * 1024) // (4 * max(c, 1))
    chunk = max(256, (target // 128) * 128)
    chunk = min(chunk, 4096)
    chunk = min(chunk, max(128, _round_up(s, 128)))
    return chunk


# ---------------------------------------------------------------------------
# Fused single-pass kernel: BN apply + SE (pool / excite / gate) + LeakyReLU.
# One grid step per batch element; the slab is read once and written once.
# The slab is swept in lane chunks so temporaries stay chunk-sized.
# ---------------------------------------------------------------------------
def _fused_bn_se_act_kernel(x_ref, bscale_ref, bshift_ref, w1t_ref, w2_ref,
                            o_ref, acc_ref, *, s, chunk, inv_s, slope):
    c = x_ref.shape[0]
    x_dtype = x_ref.dtype
    use_mxu = x_dtype != jnp.float32      # offload spatial sum to the idle MXU
    n_full = s // chunk
    rem = s - n_full * chunk

    # -------- Pass 1: per-channel spatial sum (chunked, f32 accumulation) -----
    acc_ref[...] = jnp.zeros_like(acc_ref)

    if n_full > 0:
        ones_c = jnp.ones((chunk, 1), x_dtype) if use_mxu else None  # hoisted

        @pl.loop(0, n_full)
        def _sum_chunk(i):
            start = pl.multiple_of(i * chunk, chunk)
            xc = x_ref[:, pl.ds(start, chunk)]
            if use_mxu:
                ps = jnp.dot(xc, ones_c, preferred_element_type=jnp.float32)
            else:
                ps = jnp.sum(xc, axis=-1, keepdims=True)
            acc_ref[...] = acc_ref[...] + ps

    if rem > 0:
        xt = x_ref[:, pl.ds(n_full * chunk, rem)]
        if use_mxu:
            ps = jnp.dot(xt, jnp.ones((rem, 1), x_dtype),
                         preferred_element_type=jnp.float32)
        else:
            ps = jnp.sum(xt, axis=-1, keepdims=True)
        acc_ref[...] = acc_ref[...] + ps

    # -------- Squeeze + excite (tiny; VPU/XLU broadcast ops, no MXU needed) ---
    bscale = bscale_ref[...]                                     # (C, 1) f32
    bshift = bshift_ref[...]
    # mean over valid positions of (x*bscale + bshift)
    pooled = acc_ref[...] * (bscale * inv_s) + bshift            # (C, 1)
    h = jnp.maximum(jnp.sum(w1t_ref[...] * pooled, axis=0, keepdims=True), 0.0)
    g = jax.nn.sigmoid(jnp.sum(w2_ref[...] * h, axis=-1, keepdims=True))  # (C,1)

    # Fold SE gate into the BN affine: (x*bscale + bshift)*g = x*cs + ch
    cs = bscale * g
    ch = bshift * g

    # -------- Pass 2: z = x*cs + ch ; LeakyReLU ; store (chunked) -------------
    bc_w = chunk if n_full > 0 else rem
    cs_b = jnp.broadcast_to(cs, (c, bc_w))       # hoisted lane-broadcasts
    ch_b = jnp.broadcast_to(ch, (c, bc_w))

    if n_full > 0:
        @pl.loop(0, n_full)
        def _apply_chunk(i):
            start = pl.multiple_of(i * chunk, chunk)
            xc = x_ref[:, pl.ds(start, chunk)].astype(jnp.float32)
            z = xc * cs_b + ch_b
            o_ref[:, pl.ds(start, chunk)] = jnp.maximum(z, slope * z).astype(o_ref.dtype)

    if rem > 0:
        start = n_full * chunk
        xt = x_ref[:, pl.ds(start, rem)].astype(jnp.float32)
        z = xt * cs_b[:, :rem] + ch_b[:, :rem]
        o_ref[:, pl.ds(start, rem)] = jnp.maximum(z, slope * z).astype(o_ref.dtype)


def _bn_se_act_fused(f, bscale, bshift, w1, w2, *, slope, vmem_limit_bytes):
    n, c, d, h, w = f.shape
    s = d * h * w
    cr = w1.shape[0]
    itemsize = jnp.dtype(f.dtype).itemsize
    chunk = _pick_chunk(c, s)

    x2 = f.reshape(n, c, s)          # collapses contiguous minor dims: no copy

    kernel = functools.partial(_fused_bn_se_act_kernel, s=s, chunk=chunk,
                               inv_s=1.0 / float(s), slope=slope)

    out = pl.pallas_call(
        kernel,
        out_shape=jax.ShapeDtypeStruct((n, c, s), f.dtype),
        grid_spec=pltpu.PrefetchScalarGridSpec(
            num_scalar_prefetch=0,
            grid=(n,),
            in_specs=[
                pl.BlockSpec((None, c, s), lambda b: (b, 0, 0)),   # activation slab
                pl.BlockSpec((c, 1), lambda b: (0, 0)),            # BN scale
                pl.BlockSpec((c, 1), lambda b: (0, 0)),            # BN shift
                pl.BlockSpec((c, cr), lambda b: (0, 0)),           # W1^T
                pl.BlockSpec((c, cr), lambda b: (0, 0)),           # W2
            ],
            out_specs=pl.BlockSpec((None, c, s), lambda b: (b, 0, 0)),
            scratch_shapes=[pltpu.VMEM((c, 1), jnp.float32)],      # sum accumulator
        ),
        input_output_aliases={0: 0},        # donate the conv output buffer
        compiler_params=pltpu.CompilerParams(
            dimension_semantics=("parallel",),
            vmem_limit_bytes=int(vmem_limit_bytes)),
        cost_estimate=pl.CostEstimate(
            flops=int(5 * n * c * s),
            transcendentals=int(n * c),
            bytes_accessed=int(2 * n * c * s * itemsize)),
    )(x2,
      bscale.reshape(c, 1).astype(jnp.float32),
      bshift.reshape(c, 1).astype(jnp.float32),
      w1.T.astype(jnp.float32),
      w2.astype(jnp.float32))

    return out.reshape(n, c, d, h, w)


# ---------------------------------------------------------------------------
# Spatially-tiled fallback (slab too big for VMEM): pooled+gate in plain XLA,
# then a pure streaming scale/shift/activation kernel tiled (rows, S_tile)
# with batches packed onto the sublane axis (rows = N*C).  No padding copies:
# partial edge blocks are masked by Pallas.
# ---------------------------------------------------------------------------
def _scale_shift_act_kernel(x_ref, sc_ref, sh_ref, o_ref, *, slope):
    z = x_ref[...].astype(jnp.float32) * sc_ref[...] + sh_ref[...]
    o_ref[...] = jnp.maximum(z, slope * z).astype(o_ref.dtype)


def _bn_se_act_tiled(f, bscale, bshift, w1, w2, *, slope,
                     s_tile_target=2048, row_tile_target=512):
    n, c, d, h, w = f.shape
    s = d * h * w
    itemsize = jnp.dtype(f.dtype).itemsize
    f2 = f.reshape(n, c, s)

    # Pass 1 (tiny, plain XLA): pooled BN'd mean + SE gate.
    # TODO(synk): check in the HLO that this reduction fuses into the conv
    # epilogue; if it doesn't, this path costs 3 HBM passes, which is why the
    # fused-path VMEM ceiling above is kept as high as the chip allows.
    ssum = jnp.sum(f2.astype(jnp.float32), axis=-1)                   # (N, C)
    pooled = ssum * (bscale / float(s))[None, :] + bshift[None, :]    # (N, C)
    hg = jnp.maximum(pooled @ w1.T.astype(jnp.float32), 0.0)          # (N, Cr)
    gate = jax.nn.sigmoid(hg @ w2.T.astype(jnp.float32))              # (N, C)

    # Fold BN affine + SE gate into one per-(batch, channel) scale/shift.
    comb_scale = (gate * bscale[None, :]).reshape(n * c, 1)
    comb_shift = (gate * bshift[None, :]).reshape(n * c, 1)

    rows = n * c
    s_tile = min(s_tile_target, _round_up(s, 128))
    row_tile = min(row_tile_target, _round_up(rows, 8))
    x2 = f2.reshape(rows, s)         # no padding; edge blocks masked by Pallas

    block_bytes = row_tile * s_tile * itemsize
    vmem_limit = min(4 * block_bytes + (4 << 20), _default_vmem_limit_bytes())

    kernel = functools.partial(_scale_shift_act_kernel, slope=slope)

    out = pl.pallas_call(
        kernel,
        out_shape=jax.ShapeDtypeStruct((rows, s), f.dtype),
        grid_spec=pltpu.PrefetchScalarGridSpec(
            num_scalar_prefetch=0,
            grid=(pl.cdiv(rows, row_tile), pl.cdiv(s, s_tile)),
            in_specs=[
                pl.BlockSpec((row_tile, s_tile), lambda i, j: (i, j)),
                pl.BlockSpec((row_tile, 1), lambda i, j: (i, 0)),
                pl.BlockSpec((row_tile, 1), lambda i, j: (i, 0)),
            ],
            out_specs=pl.BlockSpec((row_tile, s_tile), lambda i, j: (i, j)),
        ),
        input_output_aliases={0: 0},
        compiler_params=pltpu.CompilerParams(
            dimension_semantics=("parallel", "parallel"),
            vmem_limit_bytes=int(vmem_limit)),
        cost_estimate=pl.CostEstimate(
            flops=int(4 * rows * s),
            transcendentals=0,
            bytes_accessed=int(2 * rows * s * itemsize)),
    )(x2, comb_scale, comb_shift)

    return out.reshape(n, c, d, h, w)


# ---------------------------------------------------------------------------
# Layer / block wrappers
# ---------------------------------------------------------------------------
def _conv3d(x, w_conv, padding):
    return lax.conv_general_dilated(
        x, w_conv,
        window_strides=(1, 1, 1),
        padding=[(padding, padding)] * 3,
        dimension_numbers=("NCDHW", "OIDHW", "NCDHW"))


def _bn_se_act(f, bscale, bshift, w1, w2, *, slope, fused_vmem_budget_bytes):
    n, c, d, h, w = f.shape
    s = d * h * w
    itemsize = jnp.dtype(f.dtype).itemsize
    # Honest VMEM model for the fused path: double-buffered input + output slabs
    # (4 slab-equivalents, using layout-rounded shapes) + chunk-sized f32 temps.
    slab_bytes = _round_up(c, 8) * _round_up(s, 128) * itemsize
    chunk = _pick_chunk(c, s)
    temp_bytes = 6 * c * chunk * 4
    need = 4 * slab_bytes + temp_bytes + (2 << 20)
    if need <= fused_vmem_budget_bytes:
        return _bn_se_act_fused(f, bscale, bshift, w1, w2, slope=slope,
                                vmem_limit_bytes=fused_vmem_budget_bytes)
    return _bn_se_act_tiled(f, bscale, bshift, w1, w2, slope=slope)


def unet_block_sne_all_forward(x, params, *, padding=1, slope=0.01, eps=1e-5,
                               fused_vmem_budget_bytes=None):
    """UNetBlockSNEAll forward: two (Conv3d -> BN -> SE_BlockV3 -> LeakyReLU) layers."""
    if fused_vmem_budget_bytes is None:
        fused_vmem_budget_bytes = _default_vmem_limit_bytes()
    f = x
    for name in ("conv1", "conv2"):
        p = params[name]
        f = _conv3d(f, p["conv_w"], padding)
        bscale = p["bn_gamma"] / jnp.sqrt(p["bn_var"] + eps)
        bshift = p["bn_beta"] - p["bn_mean"] * bscale
        f = _bn_se_act(f, bscale, bshift, p["se_w1"], p["se_w2"], slope=slope,
                       fused_vmem_budget_bytes=fused_vmem_budget_bytes)
    return f


# ---------------------------------------------------------------------------
# Pure-JAX reference of the PyTorch forward (inference-mode BN, LeakyReLU act)
# ---------------------------------------------------------------------------
def _reference_forward(x, params, *, padding=1, slope=0.01, eps=1e-5):
    f = x
    for name in ("conv1", "conv2"):
        p = params[name]
        f = _conv3d(f, p["conv_w"], padding)
        scale = (p["bn_gamma"] / jnp.sqrt(p["bn_var"] + eps))
        f = (f - p["bn_mean"][None, :, None, None, None]) \
            * scale[None, :, None, None, None] \
            + p["bn_beta"][None, :, None, None, None]
        pooled = jnp.mean(f, axis=(2, 3, 4))                         # (N, C)
        g = jax.nn.sigmoid(jnp.maximum(pooled @ p["se_w1"].T, 0.0) @ p["se_w2"].T)
        f = f * g[:, :, None, None, None]
        f = jnp.where(f >= 0.0, f, slope * f)
    return f


if __name__ == "__main__":
    key = jax.random.PRNGKey(0)
    ks = jax.random.split(key, 16)

    N, CIN, COUT = 2, 4, 8
    D, H, W = 4, 6, 8
    K, PAD, R = 3, 1, 4

    x = jax.random.normal(ks[0], (N, CIN, D, H, W), dtype=jnp.float32)

    def make_layer(kseq, cin, cout):
        return dict(
            conv_w=jax.random.normal(kseq[0], (cout, cin, K, K, K), jnp.float32) * 0.1,
            bn_gamma=1.0 + 0.1 * jax.random.normal(kseq[1], (cout,), jnp.float32),
            bn_beta=0.1 * jax.random.normal(kseq[2], (cout,), jnp.float32),
            bn_mean=0.1 * jax.random.normal(kseq[3], (cout,), jnp.float32),
            bn_var=jnp.abs(1.0 + 0.1 * jax.random.normal(kseq[4], (cout,), jnp.float32)),
            se_w1=jax.random.normal(kseq[5], (cout // R, cout), jnp.float32) * 0.2,
            se_w2=jax.random.normal(kseq[6], (cout, cout // R), jnp.float32) * 0.2,
        )

    params = dict(conv1=make_layer(ks[1:8], CIN, COUT),
                  conv2=make_layer(ks[8:15], COUT, COUT))

    ref = _reference_forward(x, params, padding=PAD)

    # 1) Default path: fused single-pass BN + SE + activation kernel (jit'd so the
    #    input_output_aliases donation can take effect).
    fwd = jax.jit(functools.partial(unet_block_sne_all_forward, padding=PAD))
    out = jax.block_until_ready(fwd(x, params))
    assert out.shape == ref.shape
    assert jnp.allclose(out, ref, atol=2e-4, rtol=2e-4), "fused path mismatch"

    # 2) Force the spatially-tiled fallback (as used when the slab exceeds VMEM).
    fwd_tiled = jax.jit(functools.partial(unet_block_sne_all_forward, padding=PAD,
                                          fused_vmem_budget_bytes=1))
    out_tiled = jax.block_until_ready(fwd_tiled(x, params))
    assert jnp.allclose(out_tiled, ref, atol=2e-4, rtol=2e-4), "tiled path mismatch"

    # 3) bf16 activations through the fused kernel (exercises the MXU pooled-sum
    #    branch used when the VALU slot, not HBM, is the binding resource).
    p2 = params["conv2"]
    bscale2 = p2["bn_gamma"] / jnp.sqrt(p2["bn_var"] + 1e-5)
    bshift2 = p2["bn_beta"] - p2["bn_mean"] * bscale2
    fb16 = jax.random.normal(ks[15], (N, COUT, D, H, W), jnp.float32).astype(jnp.bfloat16)

    def bn_se_act_ref(f):
        z = f.astype(jnp.float32) * bscale2[None, :, None, None, None] \
            + bshift2[None, :, None, None, None]
        g = jax.nn.sigmoid(
            jnp.maximum(jnp.mean(z, axis=(2, 3, 4)) @ p2["se_w1"].T, 0.0) @ p2["se_w2"].T)
        z = z * g[:, :, None, None, None]
        return jnp.where(z >= 0.0, z, 0.01 * z)

    out_bf16 = jax.block_until_ready(jax.jit(functools.partial(
        _bn_se_act_fused, slope=0.01,
        vmem_limit_bytes=_default_vmem_limit_bytes()))(
            fb16, bscale2, bshift2, p2["se_w1"], p2["se_w2"]))
    assert jnp.allclose(out_bf16.astype(jnp.float32), bn_se_act_ref(fb16),
                        atol=3e-2, rtol=3e-2), "bf16 fused path mismatch"

    print("KERNEL_OK")
</pallas_src>

<mosaic_0001>
module attributes {stable_mosaic.version = 11 : i64} {
  func.func @_fused_bn_se_act_kernel(%arg0: i32, %arg1: memref<1x8x192xf32, #tpu.memory_space<vmem>>, %arg2: memref<8x1xf32, #tpu.memory_space<vmem>>, %arg3: memref<8x1xf32, #tpu.memory_space<vmem>>, %arg4: memref<8x2xf32, #tpu.memory_space<vmem>>, %arg5: memref<8x2xf32, #tpu.memory_space<vmem>>, %arg6: memref<1x8x192xf32, #tpu.memory_space<vmem>>, %arg7: memref<8x1xf32, #tpu.memory_space<vmem>>) attributes {dimension_semantics = [#tpu.dimension_semantics<parallel>], iteration_bounds = array<i64: 2>, scalar_prefetch = 0 : i64, scratch_operands = 1 : i64, tpu.core_type = #tpu.core_type<tc>, window_params = [{transform_indices = @transform_0, window_bounds = array<i64: 1, 8, 192>}, {pipeline_mode = #tpu.pipeline_mode<synchronous>, transform_indices = @transform_1, window_bounds = array<i64: 8, 1>}, {pipeline_mode = #tpu.pipeline_mode<synchronous>, transform_indices = @transform_2, window_bounds = array<i64: 8, 1>}, {pipeline_mode = #tpu.pipeline_mode<synchronous>, transform_indices = @transform_3, window_bounds = array<i64: 8, 2>}, {pipeline_mode = #tpu.pipeline_mode<synchronous>, transform_indices = @transform_4, window_bounds = array<i64: 8, 2>}, {transform_indices = @transform_5, window_bounds = array<i64: 1, 8, 192>}]} {
    %cst = arith.constant 0.000000e+00 : f32
    %0 = vector.broadcast %cst : f32 to vector<8x1xf32>
    %c0 = arith.constant 0 : index
    %c0_0 = arith.constant 0 : index
    %1 = vector.load %arg7[%c0, %c0_0] : memref<8x1xf32, #tpu.memory_space<vmem>>, vector<8x1xf32>
    tpu.vector_store %arg7[%c0, %c0_0], %0 {strides = array<i32>} : memref<8x1xf32, #tpu.memory_space<vmem>>, vector<8x1xf32>,
    %c0_1 = arith.constant 0 : index
    %c0_2 = arith.constant 0 : index
    %c0_3 = arith.constant 0 : index
    %2 = vector.load %arg1[%c0_1, %c0_2, %c0_3] : memref<1x8x192xf32, #tpu.memory_space<vmem>>, vector<1x8x192xf32>
    %3 = vector.shape_cast %2 : vector<1x8x192xf32> to vector<8x192xf32>
    %cst_4 = arith.constant dense<0.000000e+00> : vector<8xf32>
    %4 = vector.multi_reduction <add>, %3, %cst_4 [1] : vector<8x192xf32> to vector<8xf32>
    %5 = vector.shape_cast %4 : vector<8xf32> to vector<8x1xf32>
    %c0_5 = arith.constant 0 : index
    %c0_6 = arith.constant 0 : index
    %6 = vector.load %arg7[%c0_5, %c0_6] : memref<8x1xf32, #tpu.memory_space<vmem>>, vector<8x1xf32>
    %7 = arith.addf %6, %5 : vector<8x1xf32>
    %c0_7 = arith.constant 0 : index
    %c0_8 = arith.constant 0 : index
    %8 = vector.load %arg7[%c0_7, %c0_8] : memref<8x1xf32, #tpu.memory_space<vmem>>, vector<8x1xf32>
    tpu.vector_store %arg7[%c0_7, %c0_8], %7 {strides = array<i32>} : memref<8x1xf32, #tpu.memory_space<vmem>>, vector<8x1xf32>,
    %c0_9 = arith.constant 0 : index
    %c0_10 = arith.constant 0 : index
    %9 = vector.load %arg2[%c0_9, %c0_10] : memref<8x1xf32, #tpu.memory_space<vmem>>, vector<8x1xf32>
    %c0_11 = arith.constant 0 : index
    %c0_12 = arith.constant 0 : index
    %10 = vector.load %arg3[%c0_11, %c0_12] : memref<8x1xf32, #tpu.memory_space<vmem>>, vector<8x1xf32>
    %c0_13 = arith.constant 0 : index
    %c0_14 = arith.constant 0 : index
    %11 = vector.load %arg7[%c0_13, %c0_14] : memref<8x1xf32, #tpu.memory_space<vmem>>, vector<8x1xf32>
    %cst_15 = arith.constant 0.00520833349 : f32
    %12 = vector.broadcast %cst_15 : f32 to vector<8x1xf32>
    %13 = arith.mulf %9, %12 : vector<8x1xf32>
    %14 = arith.mulf %11, %13 : vector<8x1xf32>
    %15 = arith.addf %14, %10 : vector<8x1xf32>
    %c0_16 = arith.constant 0 : index
    %c0_17 = arith.constant 0 : index
    %16 = vector.load %arg4[%c0_16, %c0_17] : memref<8x2xf32, #tpu.memory_space<vmem>>, vector<8x2xf32>
    %17 = vector.broadcast %15 : vector<8x1xf32> to vector<8x2xf32>
    %18 = arith.mulf %16, %17 : vector<8x2xf32>
    %cst_18 = arith.constant dense<0.000000e+00> : vector<2xf32>
    %19 = vector.multi_reduction <add>, %18, %cst_18 [0] : vector<8x2xf32> to vector<2xf32>
    %20 = vector.shape_cast %19 : vector<2xf32> to vector<1x2xf32>
    %cst_19 = arith.constant 0.000000e+00 : f32
    %21 = vector.broadcast %cst_19 : f32 to vector<1x2xf32>
    %22 = arith.maximumf %20, %21 : vector<1x2xf32>
    %c0_20 = arith.constant 0 : index
    %c0_21 = arith.constant 0 : index
    %23 = vector.load %arg5[%c0_20, %c0_21] : memref<8x2xf32, #tpu.memory_space<vmem>>, vector<8x2xf32>
    %24 = vector.broadcast %22 : vector<1x2xf32> to vector<8x2xf32>
    %25 = arith.mulf %23, %24 : vector<8x2xf32>
    %cst_22 = arith.constant dense<0.000000e+00> : vector<8xf32>
    %26 = vector.multi_reduction <add>, %25, %cst_22 [1] : vector<8x2xf32> to vector<8xf32>
    %27 = vector.shape_cast %26 : vector<8xf32> to vector<8x1xf32>
    %28 = arith.negf %27 : vector<8x1xf32>
    %29 = math.exp %28 : vector<8x1xf32>
    %cst_23 = arith.constant 1.000000e+00 : f32
    %30 = vector.broadcast %cst_23 : f32 to vector<8x1xf32>
    %31 = arith.addf %30, %29 : vector<8x1xf32>
    %32 = arith.divf %30, %31 : vector<8x1xf32>
    %33 = arith.mulf %9, %32 : vector<8x1xf32>
    %34 = arith.mulf %10, %32 : vector<8x1xf32>
    %35 = vector.shape_cast %33 : vector<8x1xf32> to vector<8x1xf32>
    %36 = vector.broadcast %35 : vector<8x1xf32> to vector<8x192xf32>
    %37 = vector.shape_cast %34 : vector<8x1xf32> to vector<8x1xf32>
    %38 = vector.broadcast %37 : vector<8x1xf32> to vector<8x192xf32>
    %c0_24 = arith.constant 0 : index
    %c0_25 = arith.constant 0 : index
    %c0_26 = arith.constant 0 : index
    %39 = vector.load %arg1[%c0_24, %c0_25, %c0_26] : memref<1x8x192xf32, #tpu.memory_space<vmem>>, vector<1x8x192xf32>
    %40 = vector.shape_cast %39 : vector<1x8x192xf32> to vector<8x192xf32>
    %41 = arith.mulf %40, %36 : vector<8x192xf32>
    %42 = arith.addf %41, %38 : vector<8x192xf32>
    %cst_27 = arith.constant 0.00999999977 : f32
    %43 = vector.broadcast %cst_27 : f32 to vector<8x192xf32>
    %44 = arith.mulf %43, %42 : vector<8x192xf32>
    %45 = arith.maximumf %42, %44 : vector<8x192xf32>
    %c0_28 = arith.constant 0 : index
    %c0_29 = arith.constant 0 : index
    %c0_30 = arith.constant 0 : index
    %46 = vector.load %arg6[%c0_28, %c0_29, %c0_30] : memref<1x8x192xf32, #tpu.memory_space<vmem>>, vector<1x8x192xf32>
    %47 = vector.shape_cast %46 : vector<1x8x192xf32> to vector<8x192xf32>
    %48 = vector.shape_cast %45 : vector<8x192xf32> to vector<1x8x192xf32>
    tpu.vector_store %arg6[%c0_28, %c0_29, %c0_30], %48 {strides = array<i32>} : memref<1x8x192xf32, #tpu.memory_space<vmem>>, vector<1x8x192xf32>,
    return
  }
  func.func @transform_0(%arg0: i32) -> (i32, i32, i32) {
    %c0_i32 = arith.constant 0 : i32
    %c0_i32_0 = arith.constant 0 : i32
    %c0_i32_1 = arith.constant 0 : i32
    return %arg0, %c0_i32, %c0_i32_0 : i32, i32, i32
  }
  func.func @transform_1(%arg0: i32) -> (i32, i32) {
    %c0_i32 = arith.constant 0 : i32
    %c0_i32_0 = arith.constant 0 : i32
    %c0_i32_1 = arith.constant 0 : i32
    return %c0_i32, %c0_i32_0 : i32, i32
  }
  func.func @transform_2(%arg0: i32) -> (i32, i32) {
    %c0_i32 = arith.constant 0 : i32
    %c0_i32_0 = arith.constant 0 : i32
    %c0_i32_1 = arith.constant 0 : i32
    return %c0_i32, %c0_i32_0 : i32, i32
  }
  func.func @transform_3(%arg0: i32) -> (i32, i32) {
    %c0_i32 = arith.constant 0 : i32
    %c0_i32_0 = arith.constant 0 : i32
    %c0_i32_1 = arith.constant 0 : i32
    return %c0_i32, %c0_i32_0 : i32, i32
  }
  func.func @transform_4(%arg0: i32) -> (i32, i32) {
    %c0_i32 = arith.constant 0 : i32
    %c0_i32_0 = arith.constant 0 : i32
    %c0_i32_1 = arith.constant 0 : i32
    return %c0_i32, %c0_i32_0 : i32, i32
  }
  func.func @transform_5(%arg0: i32) -> (i32, i32, i32) {
    %c0_i32 = arith.constant 0 : i32
    %c0_i32_0 = arith.constant 0 : i32
    %c0_i32_1 = arith.constant 0 : i32
    return %arg0, %c0_i32, %c0_i32_0 : i32, i32, i32
  }
}

</mosaic_0001>

<bundles_post_ra>
// kernel: unet_block_sne_all_forward.2
= control target key start
LH: loop header
LB: loop body
LE: loop exit
PB: predicated region body
PF: predicated region fallthrough
CT: control target
= control target key end

     0   :  { %s419_s18 = smov 0   ;;  %s459_s0 = inlined_call_operand.vmem [shape: f32[2,8,192], index: 0, kind: input, shape index: {}, may-alias: {0,5}]   ;;  %s460_s1 = inlined_call_operand.vmem [shape: f32[8,1], index: 1, kind: input, shape index: {}]   ;;  %s461_s2 = inlined_call_operand.vmem [shape: f32[8,1], index: 2, kind: input, shape index: {}]   ;;  %s462_s3 = inlined_call_operand.vmem [shape: f32[8,2], index: 3, kind: input, shape index: {}]   ;;  %s463_s4 = inlined_call_operand.vmem [shape: f32[8,2], index: 4, kind: input, shape index: {}]   ;;  %s464_s5 = inlined_call_operand.vmem [shape: f32[2,8,192], index: 5, kind: output, shape index: {}, may-alias: {0,5}]  }
   0x1 LB: > { %s349_s19 = sadd.s32 4294967295, %s385_s18   ;;  %p353_p0 = scmp.ge.s32.totalorder %s385_s18, 1  ;;  %s385_s18 = sphi %s419_s18, %s15_s18  }
   0x2   : > { %p187_p1 = scmp.lt.s32.totalorder %s385_s18, 3 }
   0x4   : > { %p188_p2 = pnand %p353_p0, %p187_p1 }
   0x5   : > { %p215_p3 = scmp.lt.s32.totalorder (!%p188_p2), %s349_s19, 1 }
   0x6   : > { %191 = sbr.rel (%p188_p2) target bundleno = 621 (0x26d), region = 40 }
   0xb   : > { %vm225_vm0 = vcmask 7168   ;;  %v387_v0 = vmov 0.0   ;;  %s466_s19 = smov (!%p215_p3, %s349_s19), 1  ;;  %vm229_vm1 = vcmask 523264   ;;  %v388_v5 = vmov 0   ;;  %v237_v9 = vld [vmem:[%s460_s1] sm:$0xff] }
   0xc   : > { %226 = vst.msk [vmem:[#allocation2] sm:$0xff] %vm225_vm0, %v387_v0  ;;  %s361_s20 = sshll.u32 %s466_s19, 4  ;;  %373 = vset.pattern.permute.xlu0 %v388_v5  ;;  %374 = vset.pattern.permute.xlu1 %v388_v5  ;;  %v240_v10 = vmul.f32 0.0052083335, %v237_v9  ;;  %v238_v11 = vld [vmem:[%s461_s2] sm:$0xff]  ;;  %vm250_vm2 = vcmask 15360  }
   0xd   : > { %s219_s23 = scalar_lea.vmem %s459_s0, %s361_s20  ;;  %v243_v15 = vld [vmem:[%s462_s3] sm:$0xff]  ;;  %s224_s9 = scalar_lea.vmem %s464_s5, %s361_s20 }
   0xe   : > { %v227_v1 = vld [vmem:[%s219_s23] sm:$0xff]  ;;  %v228_v2 = vld [vmem:[%s219_s23 + $0x8] sm:$0xff] }
   0xf   : > { %v230_v3 = vsel %vm229_vm1, %v228_v2, 0.0  ;;  %v259_v25 = vld [vmem:[%s463_s4] sm:$0xff] }
  0x10   : > { %v231_v4 = vadd.f32 %v230_v3, %v227_v1 }
  0x12   : > { %232 = vadd.xlane.f32.xlu0 %v231_v4 }
  0x13   : > { %v234_v6 = vld [vmem:[#allocation2] sm:$0xff] }
  0x9b   : > { %v233_v7 = vpop.xlane.xlu0 %232 }
  0x9c   : > { %v235_v8 = vadd.f32 %v234_v6, %v233_v7 }
  0x9e   : > { %236 = vst.msk [vmem:[#allocation2] sm:$0xff] %vm225_vm0, %v235_v8 }
  0xa5   : > { %v239_v12 = vld [vmem:[#allocation2] sm:$0xff] }
  0xa6   : > { %v241_v13 = vmul.f32 %v240_v10, %v239_v12 }
  0xa8   : > { %v242_v14 = vadd.f32 %v241_v13, %v238_v11 }
  0xaa   : > { %246 = vperm.xlu0 %373, %v242_v14  }
 0x125   : > { %v247_v16 = vpop.permute.xlu0 %246 }
 0x126   : > { %v249_v17 = vmul.f32 %v247_v16, %v243_v15 }
 0x128   : > { %v251_v18 = vsel %vm250_vm2, %v249_v17, 0.0 }
 0x129   : > { %v252_v19 = vrot.slane %v251_v18, 4 }
 0x12b   : > { %v253_v20 = vadd.f32 %v252_v19, %v251_v18 }
 0x12d   : > { %v254_v21 = vrot.slane %v253_v20, 2 }
 0x12f   : > { %v255_v22 = vadd.f32 %v254_v21, %v253_v20 }
 0x131   : > { %v256_v23 = vrot.slane %v255_v22, 1 }
 0x133   : > { %v257_v24 = vadd.f32 %v256_v23, %v255_v22 }
 0x135   : > { %v258_v26 = vmax.f32 %v257_v24, 0.0 }
 0x137   : > { %v260_v27 = vmul.f32 %v259_v25, %v258_v26 }
 0x139   : > { %v261_v28 = vsel %vm250_vm2, %v260_v27, 0.0 }
 0x13a   : > { %262 = vadd.xlane.f32.xlu1 %v261_v28 }
 0x1c3   : > { %v263_v29 = vpop.xlane.xlu1 %262 }
 0x1c4   : > { %v358_v30 = vmul.f32 -1.442695, %v263_v29 }
 0x1c6   : > { %375 = vpow2.f32 %v358_v30 }
 0x1d3   : > { %v376_v31 = vpop.eup %375 }
 0x1d4   : > { %v267_v32 = vadd.f32 1.0, %v376_v31 }
 0x1d6   : > { %377 = vrcp.f32 %v267_v32 }
 0x1e3   : > { %v378_v33 = vpop.eup %377 }
 0x1e4   : > { %v270_v34 = vmul.f32 %v378_v33, %v237_v9  ;;  %v271_v35 = vmul.f32 %v378_v33, %v238_v11 }
 0x1e6   : > { %274 = vperm.xlu1 %374, %v270_v34  }
 0x1ea   : > { %279 = vperm.xlu1 %374, %v271_v35  }
 0x261   : > { %v275_v36 = vpop.permute.xlu1 %274 }
 0x262   : > { %v284_v37 = vmul.f32 %v275_v36, %v227_v1  ;;  %v285_v38 = vmul.f32 %v275_v36, %v228_v2 }
 0x265   : > { %v280_v39 = vpop.permute.xlu1 %279 }
 0x266   : > { %v286_v40 = vadd.f32 %v284_v37, %v280_v39  ;;  %v287_v41 = vadd.f32 %v285_v38, %v280_v39 }
 0x268   : > { %v288_v42 = vmul.f32 0.01, %v286_v40  ;;  %v289_v43 = vmul.f32 0.01, %v287_v41 }
 0x26a   : > { %v290_v44 = vmax.f32 %v286_v40, %v288_v42  ;;  %v291_v45 = vmax.f32 %v287_v41, %v289_v43 }
 0x26c   : > { %292 = vst [vmem:[%s224_s9] sm:$0xff] %v290_v44  ;;  %293 = vst.msk [vmem:[%s224_s9 + $0x8] sm:$0xff] %vm229_vm1, %v291_v45 }
 0x26d PF: > { %s15_s18 = sadd.s32 1, %s385_s18  }
 0x26e   : > { %p12_p4 = scmp.ge.s32.totalorder %s15_s18, 4  }
 0x270   :  { %14 = sbr.rel (!%p12_p4) target bundleno = 1 (0x1), region = 70 }

</bundles_post_ra>
